<compile_context>
chip_gen: v7x
topology: tpu7x:2x2x1
jax: 0.10.0
libtpu: 0.0.40
codegen_flags: <defaults>
</compile_context>

<pallas_src>
import math

import jax
import jax.numpy as jnp
from jax.experimental import pallas as pl
from jax.experimental.pallas import tpu as pltpu

_LANE = 128
_SUBLANE = 8


def _weighted_mean_kernel(w_ref, x_ref, o_ref):
    """w_ref: SMEM (H, S) f32, pre-scaled by 1/S (scalar-prefetched)
       x_ref: VMEM (S, tile_r, 128) lane-dense tile of one hop
       o_ref: VMEM (tile_r, 128) output tile for that hop
    """
    h = pl.program_id(0)
    S = x_ref.shape[0]
    # S (num_subgraphs) is small and static -> unrolled weighted sum on the VPU.
    acc = x_ref[0].astype(jnp.float32) * w_ref[h, 0]
    for s in range(1, S):
        acc = acc + x_ref[s].astype(jnp.float32) * w_ref[h, s]
    o_ref[...] = acc.astype(o_ref.dtype)


def one_dim_conv_weight_shared(feats, weights, *,
                               target_block_bytes=4 << 20,
                               vmem_limit_bytes=32 << 20):
    """feats:   (H, S, N, F)  [hop, subgraph, node, feature]
       weights: (H, S)        hop h uses weights[h] = learnable_weight[h][0]
       returns: (H, N, F) stacked aggregated features (index [h] per hop)
    """
    H, S, N, F = feats.shape
    assert weights.shape == (H, S)
    M = N * F

    # Fold the 1/S of the mean into the tiny weights array (free; saves a
    # full-tile VPU multiply per output vreg inside the kernel).
    w_scaled = weights.astype(jnp.float32) * jnp.float32(1.0 / S)

    # Flatten (N, F) into one lane-dense axis, view as rows of 128 lanes.
    pad = (-M) % _LANE
    x = feats.reshape(H, S, M)
    if pad:
        # TODO(synk): padding costs one extra HBM copy; only hit when N*F % 128 != 0.
        x = jnp.pad(x, ((0, 0), (0, 0), (0, pad)))
    Mp = M + pad
    R = Mp // _LANE
    x = x.reshape(H, S, R, _LANE)

    # Row-tile sized against the VMEM budget: block bytes ~= S*tile_r*128*itemsize,
    # double-buffered by the pipeline. Multiple of 8 sublanes (or full extent).
    bytes_per_row = S * _LANE * x.dtype.itemsize
    tile_r = max(_SUBLANE,
                 (target_block_bytes // bytes_per_row) // _SUBLANE * _SUBLANE)
    if tile_r >= R:
        tile_r = R
        if R >= 2 * _SUBLANE:
            # Keep >= 2 row-tiles per hop so v7x megacore can balance the grid.
            half = -(-R // 2)
            tile_r = min(R, -(-half // _SUBLANE) * _SUBLANE)
    n_tiles = pl.cdiv(R, tile_r)
    grid = (H, n_tiles)

    out = pl.pallas_call(
        _weighted_mean_kernel,
        out_shape=jax.ShapeDtypeStruct((H, R, _LANE), feats.dtype),
        grid_spec=pltpu.PrefetchScalarGridSpec(
            num_scalar_prefetch=1,  # weights (H, S) land in SMEM
            grid=grid,
            in_specs=[
                # hop dim squeezed out; kernel sees (S, tile_r, 128)
                pl.BlockSpec((pl.Squeezed(), S, tile_r, _LANE),
                             lambda h, r, w: (h, 0, r, 0)),
            ],
            out_specs=pl.BlockSpec((pl.Squeezed(), tile_r, _LANE),
                                   lambda h, r, w: (h, r, 0)),
        ),
        compiler_params=pltpu.CompilerParams(
            dimension_semantics=("parallel", "parallel"),
            vmem_limit_bytes=vmem_limit_bytes),
    )(w_scaled, x)

    out = out.reshape(H, Mp)
    if pad:
        out = out[:, :M]
    # Return stacked (H, N, F); callers index out[h] lazily (no eager slicing).
    return out.reshape(H, N, F)


def xavier_uniform(key, shape):
    # matches nn.init.xavier_uniform_ for a (1, num_subgraphs) weight
    fan_in, fan_out = shape[0], shape[1]
    bound = math.sqrt(6.0 / (fan_in + fan_out))
    return jax.random.uniform(key, shape, jnp.float32, -bound, bound)


if __name__ == "__main__":
    # small shapes: prop_steps (hops) H=3, num_subgraphs S=4, N=16 nodes, F=32 feats
    H, S, N, F = 3, 4, 16, 32

    key = jax.random.PRNGKey(0)
    kw, kx = jax.random.split(key)

    # deterministic "learnable_weight": H params of shape (1, S), xavier-uniform init
    w_keys = jax.random.split(kw, H)
    learnable_weight = [xavier_uniform(w_keys[i], (1, S)) for i in range(H)]
    weights = jnp.concatenate(learnable_weight, axis=0)          # (H, S)

    # feat_list_list: list (len H) of lists (len S) of (N, F) features
    feats = jax.random.normal(kx, (H, S, N, F), jnp.float32)
    feat_list_list = [[feats[h, s] for s in range(S)] for h in range(H)]

    # glue: stack the python lists into the kernel layout (H, S, N, F)
    x_stacked = jnp.stack([jnp.stack(fl, axis=0) for fl in feat_list_list], axis=0)

    out = one_dim_conv_weight_shared(x_stacked, weights)
    out = jax.block_until_ready(out)

    # reference (plain JAX) check of the weighted mean over the subgraph axis
    ref = jnp.mean(feats * weights[:, :, None, None], axis=1)    # (H, N, F)
    assert out.shape == (H, N, F)
    for h in range(H):
        assert out[h].shape == (N, F)
        assert jnp.allclose(out[h], ref[h], atol=1e-5, rtol=1e-5)

    print("KERNEL_OK")
</pallas_src>

<mosaic_0001>
module attributes {stable_mosaic.version = 11 : i64} {
  func.func @_weighted_mean_kernel(%arg0: i32, %arg1: i32, %arg2: memref<3x4xf32, #tpu.memory_space<smem>>, %arg3: memref<1x4x4x128xf32, #tpu.memory_space<vmem>>, %arg4: memref<1x4x128xf32, #tpu.memory_space<vmem>>) attributes {dimension_semantics = [#tpu.dimension_semantics<parallel>, #tpu.dimension_semantics<parallel>], iteration_bounds = array<i64: 3, 1>, scalar_prefetch = 1 : i64, scratch_operands = 0 : i64, tpu.core_type = #tpu.core_type<tc>, window_params = [{transform_indices = @transform_0, window_bounds = array<i64: 1, 4, 4, 128>}, {transform_indices = @transform_1, window_bounds = array<i64: 1, 4, 128>}]} {
    %c0 = arith.constant 0 : index
    %c0_0 = arith.constant 0 : index
    %c0_1 = arith.constant 0 : index
    %c0_2 = arith.constant 0 : index
    %0 = vector.load %arg3[%c0, %c0_0, %c0_1, %c0_2] : memref<1x4x4x128xf32, #tpu.memory_space<vmem>>, vector<1x1x4x128xf32>
    %1 = vector.shape_cast %0 : vector<1x1x4x128xf32> to vector<4x128xf32>
    %2 = arith.index_cast %arg0 : i32 to index
    %c0_3 = arith.constant 0 : index
    %3 = memref.load %arg2[%2, %c0_3] : memref<3x4xf32, #tpu.memory_space<smem>>
    %4 = vector.broadcast %3 : f32 to vector<4x128xf32>
    %5 = arith.mulf %1, %4 : vector<4x128xf32>
    %c0_4 = arith.constant 0 : index
    %c1 = arith.constant 1 : index
    %c0_5 = arith.constant 0 : index
    %c0_6 = arith.constant 0 : index
    %6 = vector.load %arg3[%c0_4, %c1, %c0_5, %c0_6] : memref<1x4x4x128xf32, #tpu.memory_space<vmem>>, vector<1x1x4x128xf32>
    %7 = vector.shape_cast %6 : vector<1x1x4x128xf32> to vector<4x128xf32>
    %8 = arith.index_cast %arg0 : i32 to index
    %c1_7 = arith.constant 1 : index
    %9 = memref.load %arg2[%8, %c1_7] : memref<3x4xf32, #tpu.memory_space<smem>>
    %10 = vector.broadcast %9 : f32 to vector<4x128xf32>
    %11 = arith.mulf %7, %10 : vector<4x128xf32>
    %12 = arith.addf %5, %11 : vector<4x128xf32>
    %c0_8 = arith.constant 0 : index
    %c2 = arith.constant 2 : index
    %c0_9 = arith.constant 0 : index
    %c0_10 = arith.constant 0 : index
    %13 = vector.load %arg3[%c0_8, %c2, %c0_9, %c0_10] : memref<1x4x4x128xf32, #tpu.memory_space<vmem>>, vector<1x1x4x128xf32>
    %14 = vector.shape_cast %13 : vector<1x1x4x128xf32> to vector<4x128xf32>
    %15 = arith.index_cast %arg0 : i32 to index
    %c2_11 = arith.constant 2 : index
    %16 = memref.load %arg2[%15, %c2_11] : memref<3x4xf32, #tpu.memory_space<smem>>
    %17 = vector.broadcast %16 : f32 to vector<4x128xf32>
    %18 = arith.mulf %14, %17 : vector<4x128xf32>
    %19 = arith.addf %12, %18 : vector<4x128xf32>
    %c0_12 = arith.constant 0 : index
    %c3 = arith.constant 3 : index
    %c0_13 = arith.constant 0 : index
    %c0_14 = arith.constant 0 : index
    %20 = vector.load %arg3[%c0_12, %c3, %c0_13, %c0_14] : memref<1x4x4x128xf32, #tpu.memory_space<vmem>>, vector<1x1x4x128xf32>
    %21 = vector.shape_cast %20 : vector<1x1x4x128xf32> to vector<4x128xf32>
    %22 = arith.index_cast %arg0 : i32 to index
    %c3_15 = arith.constant 3 : index
    %23 = memref.load %arg2[%22, %c3_15] : memref<3x4xf32, #tpu.memory_space<smem>>
    %24 = vector.broadcast %23 : f32 to vector<4x128xf32>
    %25 = arith.mulf %21, %24 : vector<4x128xf32>
    %26 = arith.addf %19, %25 : vector<4x128xf32>
    %c0_16 = arith.constant 0 : index
    %c0_17 = arith.constant 0 : index
    %c0_18 = arith.constant 0 : index
    %27 = vector.load %arg4[%c0_16, %c0_17, %c0_18] : memref<1x4x128xf32, #tpu.memory_space<vmem>>, vector<1x4x128xf32>
    %28 = vector.shape_cast %27 : vector<1x4x128xf32> to vector<4x128xf32>
    %29 = vector.shape_cast %26 : vector<4x128xf32> to vector<1x4x128xf32>
    tpu.vector_store %arg4[%c0_16, %c0_17, %c0_18], %29 {strides = array<i32>} : memref<1x4x128xf32, #tpu.memory_space<vmem>>, vector<1x4x128xf32>,
    return
  }
  func.func @transform_0(%arg0: i32, %arg1: i32, %arg2: memref<3x4xf32, #tpu.memory_space<smem>>) -> (i32, i32, i32, i32) {
    %c0_i32 = arith.constant 0 : i32
    %c0_i32_0 = arith.constant 0 : i32
    %c0_i32_1 = arith.constant 0 : i32
    return %arg0, %c0_i32, %arg1, %c0_i32_0 : i32, i32, i32, i32
  }
  func.func @transform_1(%arg0: i32, %arg1: i32, %arg2: memref<3x4xf32, #tpu.memory_space<smem>>) -> (i32, i32, i32) {
    %c0_i32 = arith.constant 0 : i32
    %c0_i32_0 = arith.constant 0 : i32
    return %arg0, %arg1, %c0_i32 : i32, i32, i32
  }
}

</mosaic_0001>

<bundles_post_ra>
// kernel: tpu_custom_call.1
= control target key start
LH: loop header
LB: loop body
LE: loop exit
PB: predicated region body
PF: predicated region fallthrough
CT: control target
= control target key end

     0   :  { %s695_s0 = inlined_call_operand.hbm [shape: f32[3,4], index: 0, kind: input, shape index: {}]   ;;  %s696_s1 = inlined_call_operand.hbm [shape: f32[3,4,4,128], index: 1, kind: input, shape index: {}]   ;;  %s697_s2 = inlined_call_operand.hbm [shape: f32[3,4,128], index: 2, kind: output, shape index: {}]  }
   0x1   :  { %s364_s11 = scalar_lea.hbm %s695_s0, 64 }
   0x2   :  { %p365_p0 = scmp.ne.s32.totalorder %s695_s0, %s364_s11  ;;  %p368_p1 = scmp.lt.u32.totalorder %s364_s11, %s695_s0 }
   0x4   :  { %p370_p2 = pnand %p368_p1, %p365_p0 }
   0x6   :  { %373 = shalt.err (!%p370_p2)  }
   0x7   :  { %s490_s16 = smov [#allocation3]  }
   0x8   :  { %8 = dma.hbm_to_smem %s695_s0, 64, %s490_s16, [#allocation2] }
   0x9   :  { %456 = dma.done.wait [#allocation2], 64 }
   0xa   :  { %457 = vsyncadd [#allocation2], 4294967232 }
   0xb   :  { %10 = sfence }
   0xc   :  { %11 = vsyncpa [#allocation5], 0 }
   0xd   :  { %13 = vsyncpa [#allocation5 + $0x1], 0 }
   0xe   :  { %14 = vsyncpa [#allocation6], 0 }
   0xf   :  { %16 = vsyncpa [#allocation6 + $0x1], 0  ;;  %s522_s19 = smov 0   ;;  %s524_s20 = smov 0  }
  0x10   :  { %s526_s21 = smov 0   ;;  %s528_s22 = smov 0  }
  0x11   :  { %s530_s23 = smov 0   ;;  %s532_s24 = smov 0  }
  0x12 LB: > { %s280_s0 = sadd.s32 4294967295, %s488_s24   ;;  %s281_s25 = sadd.s32 4294967294, %s488_s24   ;;  %s488_s24 = sphi %s532_s24, %s22_s24   ;;  %s484_s23 = sphi %s530_s23, %s711_s23   ;;  %s480_s22 = sphi %s528_s22, %s710_s22   ;;  %s476_s21 = sphi %s526_s21, %s709_s21   ;;  %s472_s20 = sphi %s524_s20, %s708_s20   ;;  %s468_s19 = sphi %s522_s19, %s707_s19  }
  0x13   : > { %s34_s26 = sadd.s32 1, %s484_s23  ;;  %s43_s27 = sadd.s32 1, %s476_s21 }
  0x14   : > { %p36_p3 = scmp.ge.s32.totalorder %s34_s26, 3  ;;  %p50_p4 = scmp.ne.s32.totalorder %s476_s21, %s472_s20 }
  0x15   : > { %p51_p5 = scmp.eq.s32.totalorder %s488_s24, 0  ;;  %p56_p6 = scmp.ne.s32.totalorder %s472_s20, %s468_s19 }
  0x16   : > { %s713_s26 = smov (%p36_p3, %s34_s26), 0  ;;  %p57_p8 = scmp.eq.s32.totalorder %s280_s0, 0 }
  0x17   : > { %p563_p7 = por %p51_p5, %p50_p4  ;;  %s38_s29 = ssub.s32 %s484_s23, %s713_s26 }
  0x18   : > { %p82_p9 = scmp.eq.s32.totalorder %s280_s0, 2  ;;  %p41_p10 = scmp.eq.s32.totalorder %s38_s29, 0 }
  0x19   : > { %p569_p11 = por %p57_p8, %p56_p6  ;;  %p88_p13 = scmp.eq.s32.totalorder %s281_s25, 2 }
  0x1a   : > { %p573_p12 = por %p82_p9, %p50_p4  ;;  %p311_p1 = scmp.lt.s32.totalorder %s488_s24, 3 }
  0x1b   : > { %s578_s4 = scalar_select %p41_p10, %s476_s21, %s43_s27  }
  0x1c   : > { %s701_s3 = scalar_select %p573_p12, 1, 0 }
  0x1d   : > { %p580_p0 = por %p88_p13, %p56_p6  ;;  %s108_s6 = sand.u32 1, %s476_s21  }
  0x1e   : > { %s284_s7 = sshll.u32 %s108_s6, 4  ;;  %s298_s8 = sshll.u32 %s484_s23, 8 }
  0x1f   : > { %s702_s5 = scalar_select %p580_p0, 1, 0 }
  0x20   : > { %s590_s11 = scalar_lea.hbm %s696_s1, %s298_s8  ;;  %s112_s12 = scalar_lea.vmem [#allocation4], %s284_s7 }
  0x21   : > { %s120_s13 = sshll.u32 %s112_s12, 4  ;;  %p596_p2 = pnand %p311_p1, %p563_p7  ;;  %s592_s13 = int_to_ptr.vmem [resolvable:$true] %s120_s13 }
  0x22   : > { %s601_s15 = scalar_lea.sflag [#allocation5], %s108_s6  ;;  %s374_s16 = scalar_lea.hbm %s590_s11, 256 }
  0x23   : > { %p375_p4 = scmp.ne.s32.totalorder %s590_s11, %s374_s16  ;;  %p376_p5 = pneg %p596_p2 }
  0x24   : > { %s379_s0 = scalar_lea.hbm %s696_s1, 768  ;;  %p380_p7 = scmp.lt.u32.totalorder %s590_s11, %s696_s1 }
  0x25   : > { %p377_p6 = pnand %p376_p5, %p375_p4  ;;  %p381_p9 = scmp.lt.u32.totalorder %s379_s0, %s374_s16 }
  0x26   : > { %p383_p13 = scmp.lt.u32.totalorder %s374_s16, %s590_s11 }
  0x27   : > { %p378_p8 = pneg %p377_p6  ;;  %p382_p10 = por %p381_p9, %p380_p7 }
  0x29   : > { %p384_p1 = por %p383_p13, %p382_p10 }
  0x2b   : > { %p385_p3 = pnand %p384_p1, %p378_p8 }
  0x2d   : > { %388 = shalt.err (!%p385_p3)
}
  0x2e   : > { %s389_s28 = scalar_lea.vmem %s592_s13, 256  ;;  %s491_s29 = smov [#allocation4]  }
  0x2f   : > { %p390_p4 = scmp.ne.s32.totalorder %s592_s13, %s389_s28  ;;  %s394_s6 = sshll.u32 %s491_s29, 4  ;;  %s395_s6 = int_to_ptr.vmem [resolvable:$false] %s394_s6 }
  0x30   : > { %s396_s7 = scalar_lea.vmem %s395_s6, 512  ;;  %p397_p12 = scmp.lt.s32.totalorder %s592_s13, %s395_s6 }
  0x31   : > { %p392_p6 = pnand %p390_p4, %p376_p5  ;;  %p398_p7 = scmp.lt.s32.totalorder %s396_s7, %s389_s28 }
  0x33   : > { %p393_p0 = pneg %p392_p6  ;;  %p399_p9 = por %p398_p7, %p397_p12 }
  0x35   : > { %p400_p10 = pnand %p399_p9, %p393_p0 }
  0x37   : > { %403 = shalt.err (!%p400_p10)
}
  0x38   : > { %s492_s8 = smov 64   ;;  %s493_s9 = smov 4  }
  0x39   : > { %306 = dma.hbm_to_vmem [thread:$0]  (!%p596_p2), %s590_s11, 256, %s592_s13, %s601_s15, %s492_s8, %s492_s8, %s493_s9  }
  0x3a   : > { %p128_p3 = scmp.lt.s32.totalorder %s488_s24, 4  ;;  %p704_p5 = scmp.ge.s32.totalorder %s488_s24, 1 }
  0x3c   : > { %p129_p8 = pnand %p704_p5, %p128_p3 }
  0x3d   : > { %s633_s10 = sand.u32 (!%p129_p8), 1, %s472_s20  }
  0x3e   : > { %132 = sbr.rel (%p129_p8) target bundleno = 101 (0x65), region = 24  ;;  %s288_s12 = sshll.u32 (!%p129_p8), %s633_s10, 4 }
  0x3f   : > { %s135_s16 = scalar_lea.sflag (!%p129_p8), [#allocation5], %s633_s10  ;;  %s138_s17 = scalar_lea.vmem (!%p129_p8), [#allocation4], %s288_s12 }
  0x45   : > { %459 = dma.done.wait (%p569_p11), %s135_s16, 256  }
  0x46   : > { %461 = vsyncadd (%p569_p11), %s135_s16, 4294967040  ;;  %s290_s11 = sshll.u32 %s480_s22, 7  ;;  %s289_s28 = sshll.u32 %s633_s10, 2  ;;  %v157_v0 = vld [vmem:[%s138_s17] sm:$0xf] }
  0x47   : > { %s159_s13 = sld [smem:[#allocation3 + %s290_s11]]  ;;  %s164_s14 = sadd.s32 1, %s290_s11  ;;  %v291_v2 = vld [vmem:[%s138_s17 + $0x4] sm:$0xf]  ;;  %v292_v3 = vld [vmem:[%s138_s17 + $0x8] sm:$0xf] }
  0x48   : > { %s171_s15 = sadd.s32 2, %s290_s11  ;;  %s165_s18 = sld [smem:[#allocation3 + %s164_s14]]  ;;  %v293_v7 = vld [vmem:[%s138_s17 + $0xc] sm:$0xf] }
  0x49   : > { %s172_s0 = sld [smem:[#allocation3 + %s171_s15]]  ;;  %s178_s25 = sadd.s32 3, %s290_s11 }
  0x4a   : > { %s179_s27 = sld [smem:[#allocation3 + %s178_s25]]  ;;  %s156_s30 = scalar_lea.vmem [#allocation7], %s289_s28 }
  0x4b   : > { %s199_s29 = sshll.u32 %s156_s30, 4  ;;  %s295_s6 = sshll.u32 %s480_s22, 6  ;;  %s644_s29 = int_to_ptr.vmem [resolvable:$true] %s199_s29 }
  0x4c   : > { %s649_s9 = scalar_lea.hbm %s697_s2, %s295_s6  ;;  %s185_s12 = scalar_lea.sflag [#allocation6], %s633_s10 }
  0x4d   : > { %v160_v1 = vstv %s159_s13  ;;  %s404_s16 = scalar_lea.vmem %s644_s29, 64  ;;  %p705_p12 = scmp.ne.s32.totalorder %s701_s3, 0 }
  0x4e   : > { %v161_v4 = vmul.f32 %v160_v1, %v157_v0  ;;  %v166_v5 = vstv %s165_s18  ;;  %p405_p11 = scmp.ne.s32.totalorder %s644_s29, %s404_s16  ;;  %s494_s22 = smov [#allocation7]  }
  0x4f   : > { %v173_v6 = vstv %s172_s0  ;;  %v167_v8 = vmul.f32 %v291_v2, %v166_v5  ;;  %s408_s17 = sshll.u32 %s494_s22, 4  ;;  %s409_s17 = int_to_ptr.vmem [resolvable:$false] %s408_s17 }
  0x50   : > { %v174_v9 = vmul.f32 %v292_v3, %v173_v6  ;;  %v180_v10 = vstv %s179_s27  ;;  %p406_p0 = pnand %p405_p11, %p705_p12  ;;  %s410_s11 = scalar_lea.vmem %s409_s17, 128 }
  0x51   : > { %v168_v11 = vadd.f32 %v167_v8, %v161_v4  ;;  %v181_v12 = vmul.f32 %v293_v7, %v180_v10  ;;  %p411_p13 = scmp.lt.s32.totalorder %s644_s29, %s409_s17  ;;  %p412_p1 = scmp.lt.s32.totalorder %s410_s11, %s404_s16 }
  0x52   : > { %p407_p2 = pneg %p406_p0 }
  0x53   : > { %v175_v13 = vadd.f32 %v174_v9, %v168_v11  ;;  %p413_p4 = por %p412_p1, %p411_p13 }
  0x55   : > { %v182_v14 = vadd.f32 %v181_v12, %v175_v13  ;;  %p414_p6 = pnand %p413_p4, %p407_p2 }
  0x57   : > { %183 = vst [vmem:[%s156_s30] sm:$0xf] %v182_v14 }
  0x58   : > { %417 = shalt.err (!%p414_p6)
}
  0x59   : > { %s418_s10 = scalar_lea.hbm %s649_s9, 64  ;;  %s422_s15 = scalar_lea.hbm %s697_s2, 192 }
  0x5a   : > { %p419_p7 = scmp.ne.s32.totalorder %s649_s9, %s418_s10  ;;  %p423_p3 = scmp.lt.u32.totalorder %s649_s9, %s697_s2 }
  0x5b   : > { %p424_p5 = scmp.lt.u32.totalorder %s422_s15, %s418_s10  ;;  %p426_p11 = scmp.lt.u32.totalorder %s418_s10, %s649_s9 }
  0x5c   : > { %p420_p9 = pnand %p419_p7, %p705_p12 }
  0x5d   : > { %p425_p8 = por %p424_p5, %p423_p3 }
  0x5e   : > { %p421_p10 = pneg %p420_p9 }
  0x5f   : > { %p427_p0 = por %p426_p11, %p425_p8 }
  0x61   : > { %p428_p2 = pnand %p427_p0, %p421_p10 }
  0x63   : > { %431 = shalt.err (!%p428_p2)
}
  0x64   : > { %301 = dma.vmem_to_hbm [thread:$0]  (%p705_p12), %s644_s29, 64, %s649_s9, %s185_s12  }
  0x65 PF: > { %p312_p13 = scmp.ge.s32.totalorder %s488_s24, 2  ;;  %s211_s25 = sand.u32 1, %s468_s19  }
  0x66   : > { %p706_p1 = scmp.ne.s32.totalorder %s702_s5, 0  ;;  %s212_s27 = scalar_lea.sflag [#allocation6], %s211_s25 }
  0x68   : > { %p308_p4 = pnand %p312_p13, %p706_p1 }
  0x6a   : > { %463 = dma.done.wait (!%p308_p4), %s212_s27, 64  }
  0x6b   : > { %465 = vsyncadd (!%p308_p4), %s212_s27, 4294967232  ;;  %s22_s24 = sadd.s32 1, %s488_s24   ;;  %s707_s19 = smov %s472_s20 }
  0x6c   : > { %p19_p6 = scmp.ge.s32.totalorder %s22_s24, 5   ;;  %s708_s20 = smov %s476_s21 }
  0x6d   : > { %s709_s21 = smov %s578_s4  ;;  %s710_s22 = smov %s484_s23 }
  0x6e   : > { %s711_s23 = smov %s713_s26  ;;  %21 = sbr.rel (!%p19_p6) target bundleno = 18 (0x12), region = 72 }
  0x75   :  { %217 = vsyncpa [#allocation5], 1 }
  0x76   :  { %219 = vsyncpa [#allocation5 + $0x1], 1 }
  0x77   :  { %220 = vsyncpa [#allocation6], 1 }
  0x78   :  { %222 = vsyncpa [#allocation6 + $0x1], 1 }

</bundles_post_ra>
